<compile_context>
chip_gen: v5e
topology: v5e:2x2
jax: 0.10.0
libtpu: 0.0.40
codegen_flags: <defaults>
</compile_context>

<pallas_src>
from functools import partial

import numpy as np

import jax
import jax.numpy as jnp
from jax.experimental import pallas as pl
from jax.experimental.pallas import tpu as pltpu

GN_EPS = 1e-5

# VPU-vs-MXU crossover for the 1x1 conv: below this, the contraction fills only
# Cin/256 (Cin/128 on v5e) of the MXU systolic depth, so it is cheaper as Cin
# broadcast multiply-adds on the VPU.
_MXU_CIN_THRESHOLD = 16


def _conv1x1(x_raw, w_raw, bias_f32):
    """1x1 conv (channel contraction) + bias, f32 result.

    x_raw: (Cin, hw) in the I/O dtype. w_raw: (Cout, Cin) in the I/O dtype.
    bias_f32: (Cout, 1) f32.
    """
    _, c_in = w_raw.shape
    if c_in <= _MXU_CIN_THRESHOLD:
        # VPU path: pairwise accumulation tree (ILP instead of a serial chain).
        x = x_raw.astype(jnp.float32)
        w = w_raw.astype(jnp.float32)
        terms = [w[:, c:c + 1] * x[c:c + 1, :] for c in range(c_in)]
        while len(terms) > 1:
            nxt = [terms[i] + terms[i + 1] for i in range(0, len(terms) - 1, 2)]
            if len(terms) % 2:
                nxt.append(terms[-1])
            terms = nxt
        y = terms[0]
    else:
        # MXU path: operands stay in the I/O dtype (bf16 callers get the fast
        # single-pass MXU on v6e/v7x); accumulate in f32.
        y = jnp.dot(w_raw, x_raw, preferred_element_type=jnp.float32)
    return y + bias_f32


def _bb_fused_kernel(x_ref, w_ref, p_ref, gmat_ref, o_ref):
    """Single-pass kernel: one sample per grid step, whole HW resident.

    x_ref: (Cin, HW) io dtype.  w_ref: (Cout, Cin) io dtype.
    p_ref: (Cout, 3) f32 columns [bias, gamma, beta].  gmat_ref: (Cout, Cout) f32.
    o_ref: (Cout, HW) io dtype.
    """
    bias = p_ref[:, 0:1]
    gamma = p_ref[:, 1:2]
    beta = p_ref[:, 2:3]

    y = _conv1x1(x_ref[...], w_ref[...], bias)                   # (Cout, HW) f32

    # GroupNorm stats: per-channel sums, then ONE fused (Cout, 2) matmul against
    # the group-averaging matrix gives E[y] and E[y^2] per channel.
    s = jnp.sum(y, axis=1, keepdims=True)                        # (Cout, 1)
    ss = jnp.sum(y * y, axis=1, keepdims=True)                   # (Cout, 1)
    g = jnp.dot(gmat_ref[...], jnp.concatenate([s, ss], axis=1),
                preferred_element_type=jnp.float32)              # (Cout, 2)
    mean = g[:, 0:1]
    var = jnp.maximum(g[:, 1:2] - mean * mean, 0.0)              # guard cancellation
    inv = jax.lax.rsqrt(var + GN_EPS)
    scale = inv * gamma
    shift = beta - mean * scale
    o_ref[...] = jnp.maximum(y * scale + shift, 0.0).astype(o_ref.dtype)


def _bb_tiled_kernel(x_ref, w_ref, p_ref, gmat_ref, o_ref, sums_ref, stat_ref):
    """HW-tiled two-sweep kernel: grid = (N, 2, T).

    sweep 0 (phase == 0): accumulate per-channel [sum, sum_sq] into sums_ref.
    sweep 1 (phase == 1): recompute the cheap conv per tile, apply the GroupNorm
    affine (finalized once at t == 0 into stat_ref) + ReLU, write the tile.
    """
    phase = pl.program_id(1)
    t = pl.program_id(2)

    bias = p_ref[:, 0:1]
    y = _conv1x1(x_ref[...], w_ref[...], bias)                   # (Cout, tile) f32

    @pl.when(jnp.logical_and(phase == 0, t == 0))
    def _zero_sums():
        sums_ref[...] = jnp.zeros_like(sums_ref)

    @pl.when(phase == 0)
    def _accumulate():
        sums_ref[:, 0:1] += jnp.sum(y, axis=1, keepdims=True)
        sums_ref[:, 1:2] += jnp.sum(y * y, axis=1, keepdims=True)

    @pl.when(jnp.logical_and(phase == 1, t == 0))
    def _finalize_stats():
        gamma = p_ref[:, 1:2]
        beta = p_ref[:, 2:3]
        g = jnp.dot(gmat_ref[...], sums_ref[...],
                    preferred_element_type=jnp.float32)          # (Cout, 2)
        mean = g[:, 0:1]
        var = jnp.maximum(g[:, 1:2] - mean * mean, 0.0)
        inv = jax.lax.rsqrt(var + GN_EPS)
        stat_ref[:, 0:1] = inv * gamma                           # scale
        stat_ref[:, 1:2] = beta - mean * inv * gamma             # shift

    @pl.when(phase == 1)
    def _write():
        scale = stat_ref[:, 0:1]
        shift = stat_ref[:, 1:2]
        o_ref[...] = jnp.maximum(y * scale + shift, 0.0).astype(o_ref.dtype)


def _per_sample_block_bytes(hw, c_in, c_out, in_item, out_item):
    x_blk = c_in * hw * in_item
    o_blk = c_out * hw * out_item
    f32_tmp = 3 * c_out * hw * 4           # y, y*y and the normalized result (f32)
    return 2 * x_blk + 2 * o_blk + f32_tmp  # x/out are double-buffered by Pallas


def _pick_hw_tile(hw, c_in, c_out, in_item, out_item, budget_bytes=8 << 20):
    if _per_sample_block_bytes(hw, c_in, c_out, in_item, out_item) <= budget_bytes:
        return hw                            # whole row fits -> fused single pass
    cand = (hw // 128) * 128
    while cand >= 128:
        if hw % cand == 0 and _per_sample_block_bytes(
                cand, c_in, c_out, in_item, out_item) <= budget_bytes:
            return cand
        cand -= 128
    # TODO(synk): HW has no multiple-of-128 divisor under budget; fall back to a
    # single pass and rely on the raised vmem_limit_bytes.
    return hw


@partial(jax.jit, static_argnames=("num_groups", "hw_tile"))
def basic_block_pallas(x_nchw, weight, bias, gamma, beta, *, num_groups, hw_tile=None):
    """x_nchw: (N, Cin, H, W). weight: (Cout, Cin) (1x1 conv). Returns (N, Cout, H, W).

    Kernel I/O dtype follows x_nchw.dtype (pass bf16 to halve HBM traffic);
    all accumulation is f32 inside the kernel.
    """
    N, Cin, H, W = x_nchw.shape
    Cout = weight.shape[0]
    HW = H * W
    assert Cout % num_groups == 0, "GroupNorm requires Cout divisible by num_groups"
    gs = Cout // num_groups

    io_dtype = x_nchw.dtype
    in_item = jnp.dtype(io_dtype).itemsize
    out_item = in_item

    # NCHW -> (N, Cin, HW): pure reshape, no transpose / extra HBM pass.
    x = x_nchw.reshape(N, Cin, HW)
    w = weight.astype(io_dtype)                                         # (Cout, Cin)
    # bias/gamma/beta packed lane-minor into a single (Cout, 3) f32 operand.
    params = jnp.stack([bias, gamma, beta], axis=1).astype(jnp.float32)  # (Cout, 3)

    # Group-averaging matrix (compile-time constant; contiguous channel groups).
    # NOTE: scaling uses the FULL spatial size even when HW is tiled on the grid.
    ch = np.arange(Cout)
    same_group = (ch[:, None] // gs) == (ch[None, :] // gs)
    gmat = jnp.asarray(same_group.astype(np.float32) / float(gs * HW))   # (Cout, Cout)

    if hw_tile is None:
        hw_tile = _pick_hw_tile(HW, Cin, Cout, in_item, out_item)
    assert HW % hw_tile == 0 and (hw_tile == HW or hw_tile % 128 == 0), \
        "hw_tile must divide H*W and be a multiple of 128 (or equal H*W)"
    tiled = hw_tile < HW

    blk_bytes = _per_sample_block_bytes(hw_tile, Cin, Cout, in_item, out_item)
    vmem_limit = int(min(max(2 * blk_bytes + (2 << 20), 4 << 20), 64 << 20))

    const_bytes = w.size * in_item + params.size * 4 + gmat.size * 4
    cost = pl.CostEstimate(
        flops=2 * N * Cout * Cin * HW * (2 if tiled else 1) + 8 * N * Cout * HW,
        transcendentals=N * Cout,
        bytes_accessed=N * Cin * HW * in_item * (2 if tiled else 1)
        + N * Cout * HW * out_item + const_bytes,
    )

    if not tiled:
        out = pl.pallas_call(
            _bb_fused_kernel,
            out_shape=jax.ShapeDtypeStruct((N, Cout, HW), io_dtype),
            grid=(N,),
            in_specs=[
                pl.BlockSpec((None, Cin, HW), lambda n: (n, 0, 0)),
                pl.BlockSpec((Cout, Cin), lambda n: (0, 0)),
                pl.BlockSpec((Cout, 3), lambda n: (0, 0)),
                pl.BlockSpec((Cout, Cout), lambda n: (0, 0)),
            ],
            out_specs=pl.BlockSpec((None, Cout, HW), lambda n: (n, 0, 0)),
            compiler_params=pltpu.CompilerParams(
                dimension_semantics=("parallel",),
                vmem_limit_bytes=vmem_limit),
            cost_estimate=cost,
        )(x, w, params, gmat)
    else:
        T = HW // hw_tile
        out = pl.pallas_call(
            _bb_tiled_kernel,
            out_shape=jax.ShapeDtypeStruct((N, Cout, HW), io_dtype),
            grid=(N, 2, T),
            in_specs=[
                pl.BlockSpec((None, Cin, hw_tile), lambda n, p, t: (n, 0, t)),
                pl.BlockSpec((Cout, Cin), lambda n, p, t: (0, 0)),
                pl.BlockSpec((Cout, 3), lambda n, p, t: (0, 0)),
                pl.BlockSpec((Cout, Cout), lambda n, p, t: (0, 0)),
            ],
            # Sweep 0 keeps the output index pinned at tile 0 (nothing useful is
            # written, and nothing is flushed); sweep 1 writes each tile once.
            out_specs=pl.BlockSpec((None, Cout, hw_tile),
                                   lambda n, p, t: (n, 0, t * p)),
            scratch_shapes=[pltpu.VMEM((Cout, 2), jnp.float32),   # [sum, sum_sq]
                            pltpu.VMEM((Cout, 2), jnp.float32)],  # [scale, shift]
            compiler_params=pltpu.CompilerParams(
                dimension_semantics=("parallel", "arbitrary", "arbitrary"),
                vmem_limit_bytes=vmem_limit),
            cost_estimate=cost,
        )(x, w, params, gmat)

    # (N, Cout, HW) -> NCHW: pure reshape, no transpose.
    return out.reshape(N, Cout, H, W)


def basic_block_reference(x_nchw, weight, bias, gamma, beta, num_groups):
    """Pure-JAX reference matching PyTorch Conv2d(1x1)+GroupNorm+ReLU."""
    N, Cin, H, W = x_nchw.shape
    Cout = weight.shape[0]
    y = jnp.einsum('nchw,oc->nohw', x_nchw, weight) + bias[None, :, None, None]
    yg = y.reshape(N, num_groups, Cout // num_groups, H, W)
    mean = jnp.mean(yg, axis=(2, 3, 4), keepdims=True)
    var = jnp.mean((yg - mean) ** 2, axis=(2, 3, 4), keepdims=True)
    yn = ((yg - mean) / jnp.sqrt(var + GN_EPS)).reshape(N, Cout, H, W)
    out = yn * gamma[None, :, None, None] + beta[None, :, None, None]
    return jnp.maximum(out, 0.0)


if __name__ == "__main__":
    # Module config: BasicBlock(in_channels=4, out_channels=16) ->
    # Conv2d 1x1 (bias=True) + GroupNorm(num_groups=max(1, 16 // 8)=2) + ReLU.
    N, Cin, H, W = 2, 4, 16, 16
    Cout = 16
    num_groups = max(1, Cout // 8)

    key = jax.random.PRNGKey(0)
    kx, kw, kb, kg, kbeta = jax.random.split(key, 5)

    x = jax.random.normal(kx, (N, Cin, H, W), dtype=jnp.float32)
    weight = jax.random.normal(kw, (Cout, Cin), dtype=jnp.float32) * 0.1  # 1x1 conv
    bias = jax.random.normal(kb, (Cout,), dtype=jnp.float32) * 0.1
    gamma = 1.0 + 0.1 * jax.random.normal(kg, (Cout,), dtype=jnp.float32)
    beta = 0.1 * jax.random.normal(kbeta, (Cout,), dtype=jnp.float32)

    ref = basic_block_reference(x, weight, bias, gamma, beta, num_groups)

    # 1) f32, fused single-pass path (grid=(N,), batch axis parallel).
    out = jax.block_until_ready(
        basic_block_pallas(x, weight, bias, gamma, beta, num_groups=num_groups))
    assert out.shape == (N, Cout, H, W)
    assert jnp.allclose(out, ref, atol=1e-4, rtol=1e-4), "fused path mismatch"

    # 2) HW-tiled two-sweep path (forced hw_tile=128 to exercise the large-image path).
    out_tiled = jax.block_until_ready(
        basic_block_pallas(x, weight, bias, gamma, beta, num_groups=num_groups,
                           hw_tile=128))
    assert jnp.allclose(out_tiled, ref, atol=1e-4, rtol=1e-4), "tiled path mismatch"

    # 3) bf16 I/O (bandwidth optimization) with f32 accumulation inside the kernel.
    x_bf16 = x.astype(jnp.bfloat16)
    out_bf16 = jax.block_until_ready(
        basic_block_pallas(x_bf16, weight, bias, gamma, beta, num_groups=num_groups))
    ref_bf16 = basic_block_reference(
        x_bf16.astype(jnp.float32), weight.astype(jnp.bfloat16).astype(jnp.float32),
        bias, gamma, beta, num_groups)
    assert out_bf16.dtype == jnp.bfloat16
    assert jnp.allclose(out_bf16.astype(jnp.float32), ref_bf16,
                        atol=2e-2, rtol=2e-2), "bf16 path mismatch"

    print("KERNEL_OK")
</pallas_src>

<mosaic_0001>
module attributes {stable_mosaic.version = 11 : i64} {
  func.func @_bb_fused_kernel(%arg0: i32, %arg1: memref<1x4x256xf32, #tpu.memory_space<vmem>>, %arg2: memref<16x4xf32, #tpu.memory_space<vmem>>, %arg3: memref<16x3xf32, #tpu.memory_space<vmem>>, %arg4: memref<16x16xf32, #tpu.memory_space<vmem>>, %arg5: memref<1x16x256xf32, #tpu.memory_space<vmem>>) attributes {dimension_semantics = [#tpu.dimension_semantics<parallel>], iteration_bounds = array<i64: 2>, scalar_prefetch = 0 : i64, scratch_operands = 0 : i64, tpu.core_type = #tpu.core_type<tc>, window_params = [{transform_indices = @transform_0, window_bounds = array<i64: 1, 4, 256>}, {pipeline_mode = #tpu.pipeline_mode<synchronous>, transform_indices = @transform_1, window_bounds = array<i64: 16, 4>}, {pipeline_mode = #tpu.pipeline_mode<synchronous>, transform_indices = @transform_2, window_bounds = array<i64: 16, 3>}, {pipeline_mode = #tpu.pipeline_mode<synchronous>, transform_indices = @transform_3, window_bounds = array<i64: 16, 16>}, {transform_indices = @transform_4, window_bounds = array<i64: 1, 16, 256>}]} {
    %c0 = arith.constant 0 : index
    %c0_0 = arith.constant 0 : index
    %0 = vector.load %arg3[%c0, %c0_0] : memref<16x3xf32, #tpu.memory_space<vmem>>, vector<16x1xf32>
    %c0_1 = arith.constant 0 : index
    %c1 = arith.constant 1 : index
    %1 = vector.load %arg3[%c0_1, %c1] : memref<16x3xf32, #tpu.memory_space<vmem>>, vector<16x1xf32>
    %c0_2 = arith.constant 0 : index
    %c2 = arith.constant 2 : index
    %2 = vector.load %arg3[%c0_2, %c2] : memref<16x3xf32, #tpu.memory_space<vmem>>, vector<16x1xf32>
    %c0_3 = arith.constant 0 : index
    %c0_4 = arith.constant 0 : index
    %c0_5 = arith.constant 0 : index
    %3 = vector.load %arg1[%c0_3, %c0_4, %c0_5] : memref<1x4x256xf32, #tpu.memory_space<vmem>>, vector<1x4x256xf32>
    %4 = vector.shape_cast %3 : vector<1x4x256xf32> to vector<4x256xf32>
    %c0_6 = arith.constant 0 : index
    %c0_7 = arith.constant 0 : index
    %5 = vector.load %arg2[%c0_6, %c0_7] : memref<16x4xf32, #tpu.memory_space<vmem>>, vector<16x4xf32>
    %6 = vector.extract_strided_slice %5 {offsets = [0, 0], sizes = [16, 1], strides = [1, 1]} : vector<16x4xf32> to vector<16x1xf32>
    %7 = vector.extract_strided_slice %4 {offsets = [0, 0], sizes = [1, 256], strides = [1, 1]} : vector<4x256xf32> to vector<1x256xf32>
    %8 = vector.broadcast %6 : vector<16x1xf32> to vector<16x256xf32>
    %9 = vector.broadcast %7 : vector<1x256xf32> to vector<16x256xf32>
    %10 = arith.mulf %8, %9 : vector<16x256xf32>
    %11 = vector.extract_strided_slice %5 {offsets = [0, 1], sizes = [16, 1], strides = [1, 1]} : vector<16x4xf32> to vector<16x1xf32>
    %12 = vector.extract_strided_slice %4 {offsets = [1, 0], sizes = [1, 256], strides = [1, 1]} : vector<4x256xf32> to vector<1x256xf32>
    %13 = vector.broadcast %11 : vector<16x1xf32> to vector<16x256xf32>
    %14 = vector.broadcast %12 : vector<1x256xf32> to vector<16x256xf32>
    %15 = arith.mulf %13, %14 : vector<16x256xf32>
    %16 = vector.extract_strided_slice %5 {offsets = [0, 2], sizes = [16, 1], strides = [1, 1]} : vector<16x4xf32> to vector<16x1xf32>
    %17 = vector.extract_strided_slice %4 {offsets = [2, 0], sizes = [1, 256], strides = [1, 1]} : vector<4x256xf32> to vector<1x256xf32>
    %18 = vector.broadcast %16 : vector<16x1xf32> to vector<16x256xf32>
    %19 = vector.broadcast %17 : vector<1x256xf32> to vector<16x256xf32>
    %20 = arith.mulf %18, %19 : vector<16x256xf32>
    %21 = vector.extract_strided_slice %5 {offsets = [0, 3], sizes = [16, 1], strides = [1, 1]} : vector<16x4xf32> to vector<16x1xf32>
    %22 = vector.extract_strided_slice %4 {offsets = [3, 0], sizes = [1, 256], strides = [1, 1]} : vector<4x256xf32> to vector<1x256xf32>
    %23 = vector.broadcast %21 : vector<16x1xf32> to vector<16x256xf32>
    %24 = vector.broadcast %22 : vector<1x256xf32> to vector<16x256xf32>
    %25 = arith.mulf %23, %24 : vector<16x256xf32>
    %26 = arith.addf %10, %15 : vector<16x256xf32>
    %27 = arith.addf %20, %25 : vector<16x256xf32>
    %28 = arith.addf %26, %27 : vector<16x256xf32>
    %29 = vector.broadcast %0 : vector<16x1xf32> to vector<16x256xf32>
    %30 = arith.addf %28, %29 : vector<16x256xf32>
    %cst = arith.constant dense<0.000000e+00> : vector<16xf32>
    %31 = vector.multi_reduction <add>, %30, %cst [1] : vector<16x256xf32> to vector<16xf32>
    %32 = vector.shape_cast %31 : vector<16xf32> to vector<16x1xf32>
    %33 = arith.mulf %30, %30 : vector<16x256xf32>
    %cst_8 = arith.constant dense<0.000000e+00> : vector<16xf32>
    %34 = vector.multi_reduction <add>, %33, %cst_8 [1] : vector<16x256xf32> to vector<16xf32>
    %35 = vector.shape_cast %34 : vector<16xf32> to vector<16x1xf32>
    %c0_9 = arith.constant 0 : index
    %c0_10 = arith.constant 0 : index
    %36 = vector.load %arg4[%c0_9, %c0_10] : memref<16x16xf32, #tpu.memory_space<vmem>>, vector<16x16xf32>
    %37 = tpu.concatenate %32, %35 in 1 : vector<16x1xf32>, vector<16x1xf32> -> vector<16x2xf32>
    %cst_11 = arith.constant dense<0.000000e+00> : vector<16x2xf32>
    %38 = tpu.matmul %36, %37, %cst_11 {dimension_numbers = #tpu.dot_dimension_numbers<[1], [0], [0], [1], [0, 0, 1, 1], [], []>} : vector<16x16xf32>, vector<16x2xf32>, vector<16x2xf32> -> vector<16x2xf32>
    %39 = vector.extract_strided_slice %38 {offsets = [0, 0], sizes = [16, 1], strides = [1, 1]} : vector<16x2xf32> to vector<16x1xf32>
    %40 = vector.extract_strided_slice %38 {offsets = [0, 1], sizes = [16, 1], strides = [1, 1]} : vector<16x2xf32> to vector<16x1xf32>
    %41 = arith.mulf %39, %39 : vector<16x1xf32>
    %42 = arith.subf %40, %41 : vector<16x1xf32>
    %cst_12 = arith.constant 0.000000e+00 : f32
    %43 = vector.broadcast %cst_12 : f32 to vector<16x1xf32>
    %44 = arith.maximumf %42, %43 : vector<16x1xf32>
    %cst_13 = arith.constant 9.99999974E-6 : f32
    %45 = vector.broadcast %cst_13 : f32 to vector<16x1xf32>
    %46 = arith.addf %44, %45 : vector<16x1xf32>
    %47 = math.rsqrt %46 : vector<16x1xf32>
    %48 = arith.mulf %47, %1 : vector<16x1xf32>
    %49 = arith.mulf %39, %48 : vector<16x1xf32>
    %50 = arith.subf %2, %49 : vector<16x1xf32>
    %51 = vector.broadcast %48 : vector<16x1xf32> to vector<16x256xf32>
    %52 = arith.mulf %30, %51 : vector<16x256xf32>
    %53 = vector.broadcast %50 : vector<16x1xf32> to vector<16x256xf32>
    %54 = arith.addf %52, %53 : vector<16x256xf32>
    %cst_14 = arith.constant 0.000000e+00 : f32
    %55 = vector.broadcast %cst_14 : f32 to vector<16x256xf32>
    %56 = arith.maximumf %54, %55 : vector<16x256xf32>
    %c0_15 = arith.constant 0 : index
    %c0_16 = arith.constant 0 : index
    %c0_17 = arith.constant 0 : index
    %57 = vector.load %arg5[%c0_15, %c0_16, %c0_17] : memref<1x16x256xf32, #tpu.memory_space<vmem>>, vector<1x16x256xf32>
    %58 = vector.shape_cast %57 : vector<1x16x256xf32> to vector<16x256xf32>
    %59 = vector.shape_cast %56 : vector<16x256xf32> to vector<1x16x256xf32>
    tpu.vector_store %arg5[%c0_15, %c0_16, %c0_17], %59 {strides = array<i32>} : memref<1x16x256xf32, #tpu.memory_space<vmem>>, vector<1x16x256xf32>,
    return
  }
  func.func @transform_0(%arg0: i32) -> (i32, i32, i32) {
    %c0_i32 = arith.constant 0 : i32
    %c0_i32_0 = arith.constant 0 : i32
    %c0_i32_1 = arith.constant 0 : i32
    return %arg0, %c0_i32, %c0_i32_0 : i32, i32, i32
  }
  func.func @transform_1(%arg0: i32) -> (i32, i32) {
    %c0_i32 = arith.constant 0 : i32
    %c0_i32_0 = arith.constant 0 : i32
    %c0_i32_1 = arith.constant 0 : i32
    return %c0_i32, %c0_i32_0 : i32, i32
  }
  func.func @transform_2(%arg0: i32) -> (i32, i32) {
    %c0_i32 = arith.constant 0 : i32
    %c0_i32_0 = arith.constant 0 : i32
    %c0_i32_1 = arith.constant 0 : i32
    return %c0_i32, %c0_i32_0 : i32, i32
  }
  func.func @transform_3(%arg0: i32) -> (i32, i32) {
    %c0_i32 = arith.constant 0 : i32
    %c0_i32_0 = arith.constant 0 : i32
    %c0_i32_1 = arith.constant 0 : i32
    return %c0_i32, %c0_i32_0 : i32, i32
  }
  func.func @transform_4(%arg0: i32) -> (i32, i32, i32) {
    %c0_i32 = arith.constant 0 : i32
    %c0_i32_0 = arith.constant 0 : i32
    %c0_i32_1 = arith.constant 0 : i32
    return %arg0, %c0_i32, %c0_i32_0 : i32, i32, i32
  }
}

</mosaic_0001>

<bundles_post_ra>
// kernel: basic_block_pallas.1
= control target key start
LH: loop header
LB: loop body
LE: loop exit
PB: predicated region body
PF: predicated region fallthrough
CT: control target
= control target key end

     0   :  { %s591_s15 = smov 0   ;;  %s672_s0 = inlined_call_operand.vmem [shape: f32[2,4,256], index: 0, kind: input, shape index: {}]   ;;  %s673_s1 = inlined_call_operand.vmem [shape: f32[16,4], index: 1, kind: input, shape index: {}]   ;;  %s674_s2 = inlined_call_operand.vmem [shape: f32[16,3], index: 2, kind: input, shape index: {}]   ;;  %s675_s3 = inlined_call_operand.vmem [shape: f32[16,16], index: 3, kind: input, shape index: {}]   ;;  %s676_s4 = inlined_call_operand.vmem [shape: f32[2,16,256], index: 4, kind: output, shape index: {}]  }
   0x1 LB: > { %s502_s16 = sadd.s32 4294967295, %s557_s15   ;;  %p506_p0 = scmp.ge.s32.totalorder %s557_s15, 1  ;;  %s557_s15 = sphi %s591_s15, %s14_s15  }
   0x2   : > { %p162_p1 = scmp.lt.s32.totalorder %s557_s15, 3 }
   0x4   : > { %p163_p2 = pnand %p506_p0, %p162_p1 }
   0x5   : > { %p188_p3 = scmp.lt.s32.totalorder (!%p163_p2), %s502_s16, 1  ;;  %s563_s7 = smov (!%p163_p2), 1  }
   0x6   : > { %166 = sbr.rel (%p163_p2) target bundleno = 879 (0x36f), region = 36  ;;  %s564_s8 = smov (!%p163_p2), 127  }
   0x7   : > { %s565_s9 = smov (!%p163_p2), 2  }
   0xb   : > { %v202_v0 = vld [vmem:[%s673_s1 + $0x8] sm:$0xff]  ;;  %v559_v1 = vmov 2   ;;  %v560_v2 = vmov 1   ;;  %v201_v3 = vld [vmem:[%s673_s1] sm:$0xff]  ;;  %v561_v4 = vmov 0   ;;  %v562_v5 = vmov 3  }
   0xc   : > { %536 = vset.pattern.permute.xlu1 %v559_v1  ;;  %534 = vset.pattern.permute.xlu0 %v560_v2  ;;  %v609_v6 = vld [vmem:[%s674_s2 + $0x8] sm:$0xff]  ;;  %v616_v7 = vld [vmem:[%s674_s2] sm:$0xff]  ;;  %s678_s16 = smov (!%p188_p3, %s502_s16), 1  ;;  %vm322_vm0 = vcmask 7168   ;;  %vm325_vm1 = vcmask 130048  }
   0xd   : > { %247 = vperm.xlu1 %536, %v202_v0   ;;  %229 = vperm.xlu0 %534, %v202_v0   ;;  %s515_s25 = sshll.u32 %s678_s16, 3  ;;  %s516_s10 = sshll.u32 %s678_s16, 5 }
   0xe   : > { %538 = vset.pattern.permute.xlu2 %v561_v4  ;;  %s192_s28 = scalar_lea.vmem %s672_s0, %s515_s25  ;;  %s197_s13 = scalar_lea.vmem %s676_s4, %s516_s10 }
   0xf   : > { %205 = vperm.xlu2 %538, %v201_v3   ;;  %v200_v9 = vld [vmem:[%s192_s28] sm:$0xff] }
  0x10   : > { %v250_v12 = vperm.slane %v200_v9, 2  ;;  %v251_v13 = vperm.slane %v200_v9, 6  ;;  %v232_v14 = vperm.slane %v200_v9, 1  ;;  %v233_v15 = vperm.slane %v200_v9, 5 }
  0x11   : > { %v268_v16 = vperm.slane %v200_v9, 3  ;;  %v269_v17 = vperm.slane %v200_v9, 7  ;;  %v214_v18 = vperm.slane %v200_v9, 0  ;;  %v215_v19 = vperm.slane %v200_v9, 4 }
  0x12   : > { %v254_v20 = vperm.slane %v250_v12, 2  ;;  %v255_v21 = vperm.slane %v251_v13, 2  ;;  %v236_v22 = vperm.slane %v232_v14, 1  ;;  %v237_v23 = vperm.slane %v233_v15, 1 }
  0x13   : > { %v272_v24 = vperm.slane %v268_v16, 3  ;;  %v273_v25 = vperm.slane %v269_v17, 3  ;;  %v218_v27 = vperm.slane %v214_v18, 0  ;;  %v219_v28 = vperm.slane %v215_v19, 0  ;;  %v320_v19 = vld [vmem:[%s675_s3] sm:$0xff] }
  0x15   : > { %537 = vset.pattern.permute.xlu1 %v562_v5  ;;  %535 = vset.pattern.permute.xlu0 %v561_v4 }
  0x16   : > { %265 = vperm.xlu1 %537, %v202_v0   ;;  %210 = vperm.xlu0 %535, %v202_v0  }
  0x17   : > { %539 = vset.pattern.permute.xlu2 %v560_v2 }
  0x18   : > { %225 = vperm.xlu2 %539, %v201_v3  }
  0x1e   : > { %540 = vset.pattern.permute.xlu1 %v559_v1  ;;  %297 = vperm.xlu0 %535, %v609_v6  }
  0x1f   : > { %243 = vperm.xlu1 %540, %v201_v3  }
  0x20   : > { %541 = vset.pattern.permute.xlu2 %v562_v5 }
  0x21   : > { %261 = vperm.xlu2 %541, %v201_v3  }
  0x26   : > { %545 = vset.pattern.permute.xlu0 %v559_v1 }
  0x27   : > { %542 = vset.pattern.permute.xlu1 %v561_v4 }
  0x28   : > { %292 = vperm.xlu1 %542, %v616_v7  }
  0x29   : > { %543 = vset.pattern.permute.xlu2 %v560_v2 }
  0x30   : > { %544 = vset.pattern.permute.xlu1 %v560_v2 }
  0x69   : > { %v206_v8 = vpop.permute.xlu2 %205 }
  0x6a   : > { %v220_v46 = vmul.f32 %v218_v27, %v206_v8  ;;  %v221_v53 = vmul.f32 %v219_v28, %v206_v8 }
  0x72   : > { %v226_v26 = vpop.permute.xlu2 %225 }
  0x73   : > { %v238_v54 = vmul.f32 %v236_v22, %v226_v26  ;;  %v239_v57 = vmul.f32 %v237_v23, %v226_v26 }
  0x75   : > { %v278_v0 = vadd.f32 %v238_v54, %v220_v46  ;;  %v279_v2 = vadd.f32 %v239_v57, %v221_v53 }
  0x7b   : > { %v262_v43 = vpop.permute.xlu2 %261 }
  0x7c   : > { %v274_v51 = vmul.f32 %v272_v24, %v262_v43  ;;  %v275_v52 = vmul.f32 %v273_v25, %v262_v43 }
  0x7f   : > { %v248_v10 = vpop.permute.xlu1 %247  ;;  %v230_v11 = vpop.permute.xlu0 %229 }
  0x80   : > { %v258_v29 = vmul.f32 %v254_v20, %v248_v10  ;;  %v259_v30 = vmul.f32 %v255_v21, %v248_v10  ;;  %v240_v31 = vmul.f32 %v236_v22, %v230_v11  ;;  %v241_v32 = vmul.f32 %v237_v23, %v230_v11 }
  0x88   : > { %v266_v33 = vpop.permute.xlu1 %265  ;;  %v211_v34 = vpop.permute.xlu0 %210 }
  0x89   : > { %v276_v35 = vmul.f32 %v272_v24, %v266_v33  ;;  %v277_v36 = vmul.f32 %v273_v25, %v266_v33  ;;  %v222_v37 = vmul.f32 %v218_v27, %v211_v34  ;;  %v223_v38 = vmul.f32 %v219_v28, %v211_v34 }
  0x8b   : > { %v284_v39 = vadd.f32 %v276_v35, %v258_v29  ;;  %v285_v40 = vadd.f32 %v277_v36, %v259_v30  ;;  %v280_v41 = vadd.f32 %v240_v31, %v222_v37  ;;  %v281_v42 = vadd.f32 %v241_v32, %v223_v38 }
  0x8d   : > { %v288_v44 = vadd.f32 %v284_v39, %v280_v41  ;;  %v289_v45 = vadd.f32 %v285_v40, %v281_v42 }
  0x90   : > { %v298_v47 = vpop.permute.xlu0 %297 }
  0x91   : > { %v630_v48 = vadd.f32 %v298_v47, %v288_v44  ;;  %v632_v49 = vadd.f32 %v298_v47, %v289_v45  ;;  %v244_v50 = vpop.permute.xlu1 %243 }
  0x92   : > { %v256_v55 = vmul.f32 %v254_v20, %v244_v50  ;;  %v257_v56 = vmul.f32 %v255_v21, %v244_v50  ;;  %v321_v20 = vld [vmem:[%s675_s3 + $0x8] sm:$0xff] }
  0x93   : > { %v307_v58 = vadd.f32 %v632_v49, %v630_v48  ;;  %v312_v59 = vmul.f32 %v630_v48, %v630_v48  ;;  %v313_v60 = vmul.f32 %v632_v49, %v632_v49 }
  0x94   : > { %v282_v61 = vadd.f32 %v274_v51, %v256_v55  ;;  %v283_v62 = vadd.f32 %v275_v52, %v257_v56 }
  0x95   : > { %308 = vadd.xlane.f32.xlu2 %v307_v58  ;;  %v317_v63 = vadd.f32 %v313_v60, %v312_v59 }
  0x96   : > { %v286_v3 = vadd.f32 %v282_v61, %v278_v0  ;;  %v287_v4 = vadd.f32 %v283_v62, %v279_v2 }
  0x97   : > { %318 = vadd.xlane.f32.xlu1 %v317_v63 }
  0x9a   : > { %v293_v5 = vpop.permute.xlu1 %292 }
  0x9b   : > { %v640_v8 = vadd.f32 %v293_v5, %v286_v3  ;;  %v642_v9 = vadd.f32 %v293_v5, %v287_v4 }
  0x9d   : > { %v304_v10 = vadd.f32 %v642_v9, %v640_v8  ;;  %v310_v11 = vmul.f32 %v640_v8, %v640_v8  ;;  %v311_v12 = vmul.f32 %v642_v9, %v642_v9 }
  0x9f   : > { %305 = vadd.xlane.f32.xlu0 %v304_v10  ;;  %v314_v13 = vadd.f32 %v311_v12, %v310_v11 }
  0xa1   : > { %315 = vadd.xlane.f32.xlu2 %v314_v13 }
 0x108   : > { %v309_v14 = vpop.xlane.xlu2 %308 }
 0x10a   : > { %v319_v15 = vpop.xlane.xlu1 %318 }
 0x10b   : > { %v324_v16 = vsel %vm322_vm0, %v309_v14, %v319_v15 }
 0x10c   : > { %346 = vmatpush.msra.mxu0 %v324_v16  ;;  %517 = vmatpush.msra.mxu1 %v324_v16 }
 0x112   : > { %v306_v17 = vpop.xlane.xlu0 %305 }
 0x114   : > { %v316_v18 = vpop.xlane.xlu2 %315 }
 0x115   : > { %v323_v21 = vsel %vm322_vm0, %v306_v17, %v316_v18 }
 0x116   : > { %347 = vmatpush.msra.mxu0 %v323_v21  ;;  %518 = vmatpush.msra.mxu1 %v323_v21 }
 0x117   : > { %511 = vmatmul.msk.f32.vlgmr.msra.gmra.mxu0 %vm325_vm1, %v320_v19  ;;  %512 = vmatmul.msk.f32.vlgmr.msra.gmra.mxu1 %vm325_vm1, %v321_v20 }
 0x194   : > { %v349_v22 = vpop.f32.mrf.mxu0  ;;  %v352_v23 = vpop.f32.mrf.mxu1 }
 0x195   : > { %v355_v24 = vmul.f32 %v349_v22, %v349_v22  ;;  %v356_v25 = vmul.f32 %v352_v23, %v352_v23 }
 0x197   : > { %361 = vrot.lane.b32.xlu1 %v356_v25, %s563_s7  ;;  %359 = vrot.lane.b32.xlu2 %v355_v24, %s563_s7 }
 0x1f1   : > { %v360_v26 = vpop.permute.xlu2 %359 }
 0x1f2   : > { %v365_v27 = vsub.f32 %v349_v22, %v360_v26 }
 0x1f4   : > { %v367_v28 = vmax.f32 %v365_v27, 0.0 }
 0x1f6   : > { %v369_v29 = vadd.f32 1e-05, %v367_v28 }
 0x1f8   : > { %547 = vrsqrt.f32 %v369_v29  ;;  %vm377_vm3 = vweird.f32 %v369_v29 }
 0x1fe   : > { %v548_v30 = vpop.eup %547 }
 0x1ff   : > { %v372_v31 = vmul.f32 %v548_v30, %v369_v29  ;;  %vm378_vm2 = vweird.f32 %v548_v30 }
 0x200   : > { %vm379_vm4 = vmor %vm377_vm3, %vm378_vm2 }
 0x201   : > { %v373_v32 = vmul.f32 %v548_v30, %v372_v31 }
 0x203   : > { %v374_v33 = vmul.f32 0.5, %v373_v32 }
 0x205   : > { %v375_v34 = vsub.f32 1.5, %v374_v33 }
 0x207   : > { %v376_v35 = vmul.f32 %v548_v30, %v375_v34 }
 0x209   : > { %v362_v36 = vpop.permute.xlu1 %361  ;;  %v380_v37 = vsel %vm379_vm4, %v548_v30, %v376_v35 }
 0x20a   : > { %v366_v38 = vsub.f32 %v352_v23, %v362_v36  ;;  %v391_v39 = vmul.f32 %v380_v37, %v616_v7 }
 0x20c   : > { %v368_v40 = vmax.f32 %v366_v38, 0.0  ;;  %395 = vrot.lane.b32.xlu0 %v391_v39, %s564_s8 }
 0x20e   : > { %v370_v41 = vadd.f32 1e-05, %v368_v40 }
 0x210   : > { %549 = vrsqrt.f32 %v370_v41  ;;  %vm387_vm6 = vweird.f32 %v370_v41 }
 0x216   : > { %v550_v42 = vpop.eup %549 }
 0x217   : > { %v382_v43 = vmul.f32 %v550_v42, %v370_v41  ;;  %vm388_vm5 = vweird.f32 %v550_v42 }
 0x218   : > { %vm389_vm7 = vmor %vm387_vm6, %vm388_vm5 }
 0x219   : > { %v383_v44 = vmul.f32 %v550_v42, %v382_v43 }
 0x21b   : > { %v384_v45 = vmul.f32 0.5, %v383_v44 }
 0x21d   : > { %v385_v46 = vsub.f32 1.5, %v384_v45 }
 0x21f   : > { %v386_v47 = vmul.f32 %v550_v42, %v385_v46 }
 0x221   : > { %v390_v50 = vsel %vm389_vm7, %v550_v42, %v386_v47 }
 0x222   : > { %v392_v51 = vmul.f32 %v390_v50, %v609_v6 }
 0x224   : > { %397 = vrot.lane.b32.xlu2 %v392_v51, %s564_s8 }
 0x22c   : > { %414 = vperm.xlu2 %543, %v391_v39  }
 0x234   : > { %546 = vset.pattern.permute.xlu2 %v559_v1 }
 0x27e   : > { %v396_v52 = vpop.permute.xlu0 %395  ;;  %v398_v53 = vpop.permute.xlu2 %397 }
 0x27f   : > { %v401_v54 = vmul.f32 %v396_v52, %v349_v22  ;;  %v402_v55 = vmul.f32 %v398_v53, %v352_v23 }
 0x281   : > { %405 = vrot.lane.b32.xlu1 %v401_v54, %s565_s9  ;;  %407 = vrot.lane.b32.xlu0 %v402_v55, %s565_s9 }
 0x286   : > { %v415_v60 = vpop.permute.xlu2 %414 }
 0x287   : > { %v422_v4 = vmul.f32 %v415_v60, %v642_v9 }
 0x289   : > { %418 = vperm.xlu1 %544, %v392_v51  }
 0x2f3   : > { %v406_v56 = vpop.permute.xlu1 %405  ;;  %v408_v57 = vpop.permute.xlu0 %407 }
 0x2f4   : > { %v411_v58 = vsub.f32 %v616_v7, %v406_v56  ;;  %v412_v59 = vsub.f32 %v609_v6, %v408_v57  ;;  %v421_v6 = vmul.f32 %v415_v60, %v640_v8 }
 0x2f6   : > { %427 = vperm.xlu0 %545, %v411_v58   ;;  %432 = vperm.xlu2 %546, %v412_v59  }
 0x2fb   : > { %v419_v61 = vpop.permute.xlu1 %418 }
 0x2fc   : > { %v423_v1 = vmul.f32 %v419_v61, %v630_v48  ;;  %v424_v62 = vmul.f32 %v419_v61, %v632_v49 }
 0x350   : > { %v433_v63 = vpop.permute.xlu2 %432 }
 0x351   : > { %v437_v0 = vadd.f32 %v433_v63, %v423_v1  ;;  %v438_v2 = vadd.f32 %v433_v63, %v424_v62 }
 0x353   : > { %v441_v3 = vmax.f32 %v437_v0, 0.0  ;;  %v442_v7 = vmax.f32 %v438_v2, 0.0 }
 0x355   : > { %445 = vst [vmem:[%s197_s13 + $0x10] sm:$0xff] %v441_v3 }
 0x356   : > { %446 = vst [vmem:[%s197_s13 + $0x18] sm:$0xff] %v442_v7 }
 0x368   : > { %v428_v5 = vpop.permute.xlu0 %427 }
 0x369   : > { %v435_v48 = vadd.f32 %v428_v5, %v421_v6  ;;  %v436_v10 = vadd.f32 %v428_v5, %v422_v4 }
 0x36b   : > { %v439_v49 = vmax.f32 %v435_v48, 0.0  ;;  %v440_v11 = vmax.f32 %v436_v10, 0.0 }
 0x36d   : > { %443 = vst [vmem:[%s197_s13] sm:$0xff] %v439_v49 }
 0x36e   : > { %444 = vst [vmem:[%s197_s13 + $0x8] sm:$0xff] %v440_v11 }
 0x36f PF: > { %s14_s15 = sadd.s32 1, %s557_s15  }
 0x370   : > { %p11_p4 = scmp.ge.s32.totalorder %s14_s15, 4  }
 0x372   :  { %13 = sbr.rel (!%p11_p4) target bundleno = 1 (0x1), region = 66 }

</bundles_post_ra>
